<compile_context>
chip_gen: v6e
topology: v6e:2x2x1
jax: 0.10.0
libtpu: 0.0.40
codegen_flags: <defaults>
</compile_context>

<pallas_src>
import functools
import math

import jax
import jax.numpy as jnp
from jax.experimental import pallas as pl
from jax.experimental.pallas import tpu as pltpu

LANES = 128
_LOG_EPS = math.log(1e-6)   # stand-in for the reference's log(pt + 1e-6) at saturation
_PAD_LOGIT = -30.0          # sigmoid(-30) ~ 9e-14 -> padded pixels contribute ~0


def _round_up(x, m):
    return (x + m - 1) // m * m


def _cdiv(a, b):
    return (a + b - 1) // b


def _tpu_caps():
    """Best-effort chip query (VMEM capacity, TensorCores/chip) with safe fallbacks."""
    vmem_bytes = 64 << 20          # smallest current physical VMEM (v7x)
    num_cores = None
    try:
        info = pltpu.get_tpu_info()
        for name in ("vmem_capacity_bytes", "vmem_bytes", "vmem_size_bytes"):
            v = getattr(info, name, None)
            if v:
                vmem_bytes = int(v)
                break
        for name in ("num_cores", "core_count", "num_tensorcores",
                     "tensorcores_per_chip"):
            v = getattr(info, name, None)
            if v:
                num_cores = int(v)
                break
    except Exception:
        pass
    return vmem_bytes, num_cores


def _ipow(base, g):
    """Exact small-integer power via repeated multiply (keeps pow off the EUP)."""
    if float(g).is_integer() and 0 <= g <= 8:
        g = int(g)
        if g == 0:
            return jnp.ones_like(base)
        r = base
        for _ in range(g - 1):
            r = r * base
        return r
    return base ** jnp.float32(g)


def _focal_combo_kernel(logits_ref, targets_ref, out_ref, acc_ref, *,
                        c1, c0, batch, gamma):
    """Accumulates per-pixel [focal, tp, fp, fn] into a (4,8,128) scratch slab."""
    s = pl.program_id(1)
    n_s = pl.num_programs(1)

    @pl.when(s == 0)
    def _init():
        acc_ref[...] = jnp.zeros_like(acc_ref)

    x = logits_ref[...].astype(jnp.float32)           # (B, SUB, 128)
    t = targets_ref[...].astype(jnp.float32)          # (B, SUB, 128), binary 0/1

    # log-sigmoid factorization: 3 EUP pushes per element (exp, recip, log).
    e = jnp.exp(-x)
    one_p_e = 1.0 + e
    p = pl.reciprocal(one_p_e)                        # sigmoid(x), full precision
    L = jnp.log(one_p_e)                              # = -log(sigmoid(x))
    logp = jnp.maximum(-L, _LOG_EPS)                  # ~ log(p + 1e-6)
    log1mp = jnp.maximum(-x - L, _LOG_EPS)            # ~ log(1 - p + 1e-6)

    # Focal value of prob-row i at a pixel, for the target==1 / target==0 branch.
    # c1 = -(alpha * w1), c0 = -(alpha * w0) are folded trace-time constants.
    f1 = c1 * _ipow(1.0 - p, gamma) * logp
    f0 = c0 * _ipow(p, gamma) * log1mp

    fB = jnp.float32(batch)
    n1 = jnp.sum(t, axis=0)                           # (SUB,128): #positives per pixel
    ps = jnp.sum(p, axis=0)                           # (SUB,128): sum of probs per pixel
    F1 = jnp.sum(f1, axis=0)
    F0 = jnp.sum(f0, axis=0)

    # Exact factorization of the pairwise [B, B, H, W] broadcast (binary targets).
    focal_e = n1 * F1 + (fB - n1) * F0
    tp_e = ps * n1
    fp_e = ps * (fB - n1)
    fn_e = (fB - ps) * n1

    sub = focal_e.shape[0]

    def fold(v):                                      # (SUB,128) -> (8,128); whole-tile regroup
        return v.reshape(sub // 8, 8, LANES).sum(axis=0)

    acc_ref[0] += fold(focal_e)
    acc_ref[1] += fold(tp_e)
    acc_ref[2] += fold(fp_e)
    acc_ref[3] += fold(fn_e)

    @pl.when(s == n_s - 1)
    def _finalize():
        fo = jnp.sum(acc_ref[0])
        tp = jnp.sum(acc_ref[1])
        fp = jnp.sum(acc_ref[2])
        fn = jnp.sum(acc_ref[3])
        row = jax.lax.broadcasted_iota(jnp.int32, (8, LANES), 0)
        lane = jax.lax.broadcasted_iota(jnp.int32, (8, LANES), 1)
        slab = jnp.zeros((8, LANES), jnp.float32)
        slab = jnp.where((row == 0) & (lane == 0), fo, slab)
        slab = jnp.where((row == 0) & (lane == 1), tp, slab)
        slab = jnp.where((row == 0) & (lane == 2), fp, slab)
        slab = jnp.where((row == 0) & (lane == 3), fn, slab)
        out_ref[0] = slab


def focal_combo_loss(logits, targets, *, alpha=0.5, gamma=2.0, beta=1.0, weight=None):
    """JAX wrapper: layout glue + Pallas reduction kernel + scalar epilogue."""
    if targets.ndim == 4 and targets.shape[1] == 1:
        targets = jnp.squeeze(targets, axis=1)
    B, C, H, W = logits.shape
    assert C == 1, "FocalComboLoss expects logits of shape [B, 1, H, W]"
    HW = H * W

    # NOTE: the pairwise-broadcast factorization (and the int8 cast) assume
    # strictly binary {0,1} targets, as the PyTorch module implies.
    targets2 = targets.reshape(B, HW).astype(jnp.int8)
    logits2 = logits.reshape(B, HW)
    if logits2.dtype not in (jnp.dtype(jnp.float32), jnp.dtype(jnp.bfloat16)):
        logits2 = logits2.astype(jnp.float32)

    nrows = _cdiv(HW, LANES)

    # Sublane packing so every (SUB,128) block is whole native tiles for both dtypes.
    pack = 8 * max(4 // logits2.dtype.itemsize, 4 // targets2.dtype.itemsize)

    vmem_bytes, num_cores = _tpu_caps()

    # ~2 MiB (f32-equivalent) per-input block: amortizes per-step overhead while
    # leaving room for double-buffered DMA + in-kernel f32 temporaries on v7x.
    budget = 2 << 20
    sub_cap = max(pack, (budget // (B * LANES * 4)) // pack * pack)

    if num_cores is None or num_cores < 1:
        # Unknown chip: 2-way split only when there is enough work for it to be
        # harmless on single-core parts and useful on v7x megacore.
        num_cores = 2 if nrows >= 4 * pack else 1
    num_cores = min(int(num_cores), 4)
    nsplit = num_cores if (num_cores > 1 and nrows >= num_cores * pack) else 1

    # Rebalance the tile size against the real row count: padding is bounded by
    # < one pack group per (split, tile) instead of up to a whole tile.
    tiles_per_split = max(1, _cdiv(nrows, nsplit * sub_cap))
    sub = _round_up(_cdiv(nrows, nsplit * tiles_per_split), pack)
    nrows_pad = sub * nsplit * tiles_per_split
    pad = nrows_pad * LANES - HW

    if pad:
        # -30 logits + 0 targets => padded pixels contribute ~1e-13; no in-kernel mask.
        logits2 = jnp.pad(logits2, ((0, 0), (0, pad)), constant_values=_PAD_LOGIT)
        targets2 = jnp.pad(targets2, ((0, 0), (0, pad)))
    logits3 = logits2.reshape(B, nrows_pad, LANES)
    targets3 = targets2.reshape(B, nrows_pad, LANES)

    w0, w1 = (1.0, 1.0) if weight is None else (float(weight[0]), float(weight[1]))
    kernel = functools.partial(
        _focal_combo_kernel,
        c1=-float(alpha) * w1,
        c0=-float(alpha) * w0,
        batch=B,
        gamma=float(gamma),
    )

    blk_f32 = B * sub * LANES * 4
    blk_in = B * sub * LANES * (logits3.dtype.itemsize + targets3.dtype.itemsize)
    vmem_limit = 2 * blk_in + 16 * blk_f32 + (1 << 20)       # DMA bufs + f32 temporaries
    vmem_limit = int(min(max(vmem_limit, 8 << 20), 48 << 20,
                         max(vmem_bytes - (16 << 20), 8 << 20)))

    total_in_bytes = (logits3.size * logits3.dtype.itemsize
                      + targets3.size * targets3.dtype.itemsize)
    cost = pl.CostEstimate(
        flops=26 * B * HW,
        transcendentals=3 * B * HW,                  # exp + recip + log per element
        bytes_accessed=total_in_bytes + nsplit * 8 * LANES * 4,
    )

    in_idx = lambda c, s: (0, c * tiles_per_split + s, 0)
    partials = pl.pallas_call(
        kernel,
        out_shape=jax.ShapeDtypeStruct((nsplit, 8, LANES), jnp.float32),
        grid_spec=pltpu.PrefetchScalarGridSpec(
            num_scalar_prefetch=0,
            grid=(nsplit, tiles_per_split),
            in_specs=[
                pl.BlockSpec((B, sub, LANES), in_idx),
                pl.BlockSpec((B, sub, LANES), in_idx),
            ],
            out_specs=pl.BlockSpec((1, 8, LANES), lambda c, s: (c, 0, 0)),
            scratch_shapes=[pltpu.VMEM((4, 8, LANES), jnp.float32)],
        ),
        compiler_params=pltpu.CompilerParams(
            dimension_semantics=("parallel", "arbitrary"),
            vmem_limit_bytes=vmem_limit),
        cost_estimate=cost,
    )(logits3, targets3)

    sums = jnp.sum(partials[:, 0, :4], axis=0)       # reduce across megacore splits
    focal_sum, tp, fp, fn = sums[0], sums[1], sums[2], sums[3]
    n_elems = jnp.float32(B * B * HW)                # broadcast [B,B,H,W] element count
    focal_loss = focal_sum / n_elems
    dice_loss = 1.0 - (2.0 * tp / (2.0 * tp + fp + fn + 1e-6)) ** (1.0 / beta)
    return jnp.float32(alpha) * focal_loss + jnp.float32(1.0 - alpha) * dice_loss


def _reference_loss(logits, targets, alpha=0.5, gamma=2.0, beta=1.0, weight=None):
    """Pure-JAX replica of the PyTorch forward (sanity check)."""
    if targets.ndim == 4 and targets.shape[1] == 1:
        targets = jnp.squeeze(targets, axis=1)
    probs = jax.nn.sigmoid(logits)                       # [B,1,H,W]
    pt = probs * targets + (1 - probs) * (1 - targets)   # broadcast -> [B,B,H,W]
    focal = -alpha * (1 - pt) ** gamma * jnp.log(pt + 1e-6)
    if weight is not None:
        focal = focal * (weight[1] * targets + weight[0] * (1 - targets))
    focal = focal.mean()
    tp = jnp.sum(probs * targets)
    fp = jnp.sum(probs * (1 - targets))
    fn = jnp.sum((1 - probs) * targets)
    dice = 1 - (2 * tp / (2 * tp + fp + fn + 1e-6)) ** (1 / beta)
    return alpha * focal + (1 - alpha) * dice


if __name__ == "__main__":
    key = jax.random.PRNGKey(0)
    k1, k2, k3, k4 = jax.random.split(key, 4)

    # Case 1: default hyper-params, HW a multiple of 128.
    B, H, W = 2, 16, 16
    logits = jax.random.normal(k1, (B, 1, H, W), dtype=jnp.float32)
    targets = (jax.random.uniform(k2, (B, 1, H, W)) > 0.5).astype(jnp.float32)
    out = jax.block_until_ready(focal_combo_loss(logits, targets))
    ref = jax.block_until_ready(_reference_loss(logits, targets))
    assert jnp.allclose(out, ref, rtol=2e-4, atol=2e-5), (out, ref)

    # Case 2: weights / alpha / gamma / beta, plus non-multiple-of-128 spatial size
    # (exercises the -30 logit padding path).
    B2, H2, W2 = 2, 9, 9
    logits2 = jax.random.normal(k3, (B2, 1, H2, W2), dtype=jnp.float32)
    targets2 = (jax.random.uniform(k4, (B2, 1, H2, W2)) > 0.5).astype(jnp.float32)
    w = (0.3, 0.7)
    out_w = jax.block_until_ready(
        focal_combo_loss(logits2, targets2, alpha=0.25, gamma=2.0, beta=2.0, weight=w))
    ref_w = jax.block_until_ready(
        _reference_loss(logits2, targets2, alpha=0.25, gamma=2.0, beta=2.0, weight=w))
    assert jnp.allclose(out_w, ref_w, rtol=2e-4, atol=2e-5), (out_w, ref_w)

    print("KERNEL_OK")
</pallas_src>

<mosaic_0001>
module attributes {stable_mosaic.version = 11 : i64} {
  func.func @_focal_combo_kernel(%arg0: i32, %arg1: i32, %arg2: memref<2x32x128xf32, #tpu.memory_space<vmem>>, %arg3: memref<2x32x128xi8, #tpu.memory_space<vmem>>, %arg4: memref<1x8x128xf32, #tpu.memory_space<vmem>>, %arg5: memref<4x8x128xf32, #tpu.memory_space<vmem>>) attributes {dimension_semantics = [#tpu.dimension_semantics<parallel>, #tpu.dimension_semantics<arbitrary>], iteration_bounds = array<i64: 1, 1>, scalar_prefetch = 0 : i64, scratch_operands = 1 : i64, tpu.core_type = #tpu.core_type<tc>, window_params = [{transform_indices = @transform_0, window_bounds = array<i64: 2, 32, 128>}, {transform_indices = @transform_1, window_bounds = array<i64: 2, 32, 128>}, {transform_indices = @transform_2, window_bounds = array<i64: 1, 8, 128>}]} {
    %c0_i32 = arith.constant 0 : i32
    %0 = arith.cmpi eq, %arg1, %c0_i32 : i32
    %1 = arith.extui %0 : i1 to i32
    %c0_i32_0 = arith.constant 0 : i32
    %2 = arith.cmpi ne, %1, %c0_i32_0 : i32
    scf.if %2 {
      %cst_48 = arith.constant 0.000000e+00 : f32
      %83 = vector.broadcast %cst_48 : f32 to vector<4x8x128xf32>
      %c0_49 = arith.constant 0 : index
      %c0_50 = arith.constant 0 : index
      %c0_51 = arith.constant 0 : index
      %84 = vector.load %arg5[%c0_49, %c0_50, %c0_51] : memref<4x8x128xf32, #tpu.memory_space<vmem>>, vector<4x8x128xf32>
      tpu.vector_store %arg5[%c0_49, %c0_50, %c0_51], %83 {strides = array<i32>} : memref<4x8x128xf32, #tpu.memory_space<vmem>>, vector<4x8x128xf32>,
    } else {
    }
    %c0 = arith.constant 0 : index
    %c0_1 = arith.constant 0 : index
    %c0_2 = arith.constant 0 : index
    %3 = vector.load %arg2[%c0, %c0_1, %c0_2] : memref<2x32x128xf32, #tpu.memory_space<vmem>>, vector<2x32x128xf32>
    %c0_3 = arith.constant 0 : index
    %c0_4 = arith.constant 0 : index
    %c0_5 = arith.constant 0 : index
    %4 = vector.load %arg3[%c0_3, %c0_4, %c0_5] : memref<2x32x128xi8, #tpu.memory_space<vmem>>, vector<2x32x128xi8>
    %5 = arith.sitofp %4 : vector<2x32x128xi8> to vector<2x32x128xf32>
    %cst = arith.constant 0.000000e+00 : f32
    %6 = vector.broadcast %cst : f32 to vector<2x32x128xf32>
    %7 = arith.subf %6, %3 : vector<2x32x128xf32>
    %8 = math.exp %7 : vector<2x32x128xf32>
    %cst_6 = arith.constant 1.000000e+00 : f32
    %9 = vector.broadcast %cst_6 : f32 to vector<2x32x128xf32>
    %10 = arith.addf %9, %8 : vector<2x32x128xf32>
    %11 = tpu.reciprocal %10 : vector<2x32x128xf32> -> vector<2x32x128xf32>
    %12 = math.log %10 : vector<2x32x128xf32>
    %cst_7 = arith.constant 0.000000e+00 : f32
    %13 = vector.broadcast %cst_7 : f32 to vector<2x32x128xf32>
    %14 = arith.subf %13, %12 : vector<2x32x128xf32>
    %cst_8 = arith.constant -13.8155107 : f32
    %15 = vector.broadcast %cst_8 : f32 to vector<2x32x128xf32>
    %16 = arith.maximumf %14, %15 : vector<2x32x128xf32>
    %cst_9 = arith.constant 0.000000e+00 : f32
    %17 = vector.broadcast %cst_9 : f32 to vector<2x32x128xf32>
    %18 = arith.subf %17, %3 : vector<2x32x128xf32>
    %19 = arith.subf %18, %12 : vector<2x32x128xf32>
    %cst_10 = arith.constant -13.8155107 : f32
    %20 = vector.broadcast %cst_10 : f32 to vector<2x32x128xf32>
    %21 = arith.maximumf %19, %20 : vector<2x32x128xf32>
    %cst_11 = arith.constant 1.000000e+00 : f32
    %22 = vector.broadcast %cst_11 : f32 to vector<2x32x128xf32>
    %23 = arith.subf %22, %11 : vector<2x32x128xf32>
    %24 = arith.mulf %23, %23 : vector<2x32x128xf32>
    %cst_12 = arith.constant -5.000000e-01 : f32
    %25 = vector.broadcast %cst_12 : f32 to vector<2x32x128xf32>
    %26 = arith.mulf %25, %24 : vector<2x32x128xf32>
    %27 = arith.mulf %26, %16 : vector<2x32x128xf32>
    %28 = arith.mulf %11, %11 : vector<2x32x128xf32>
    %cst_13 = arith.constant -5.000000e-01 : f32
    %29 = vector.broadcast %cst_13 : f32 to vector<2x32x128xf32>
    %30 = arith.mulf %29, %28 : vector<2x32x128xf32>
    %31 = arith.mulf %30, %21 : vector<2x32x128xf32>
    %cst_14 = arith.constant dense<0.000000e+00> : vector<32x128xf32>
    %32 = vector.multi_reduction <add>, %5, %cst_14 [0] : vector<2x32x128xf32> to vector<32x128xf32>
    %cst_15 = arith.constant dense<0.000000e+00> : vector<32x128xf32>
    %33 = vector.multi_reduction <add>, %11, %cst_15 [0] : vector<2x32x128xf32> to vector<32x128xf32>
    %cst_16 = arith.constant dense<0.000000e+00> : vector<32x128xf32>
    %34 = vector.multi_reduction <add>, %27, %cst_16 [0] : vector<2x32x128xf32> to vector<32x128xf32>
    %cst_17 = arith.constant dense<0.000000e+00> : vector<32x128xf32>
    %35 = vector.multi_reduction <add>, %31, %cst_17 [0] : vector<2x32x128xf32> to vector<32x128xf32>
    %36 = arith.mulf %32, %34 : vector<32x128xf32>
    %cst_18 = arith.constant 2.000000e+00 : f32
    %37 = vector.broadcast %cst_18 : f32 to vector<32x128xf32>
    %38 = arith.subf %37, %32 : vector<32x128xf32>
    %39 = arith.mulf %38, %35 : vector<32x128xf32>
    %40 = arith.addf %36, %39 : vector<32x128xf32>
    %41 = arith.mulf %33, %32 : vector<32x128xf32>
    %cst_19 = arith.constant 2.000000e+00 : f32
    %42 = vector.broadcast %cst_19 : f32 to vector<32x128xf32>
    %43 = arith.subf %42, %32 : vector<32x128xf32>
    %44 = arith.mulf %33, %43 : vector<32x128xf32>
    %cst_20 = arith.constant 2.000000e+00 : f32
    %45 = vector.broadcast %cst_20 : f32 to vector<32x128xf32>
    %46 = arith.subf %45, %33 : vector<32x128xf32>
    %47 = arith.mulf %46, %32 : vector<32x128xf32>
    %c0_21 = arith.constant 0 : index
    %c0_22 = arith.constant 0 : index
    %c0_23 = arith.constant 0 : index
    %48 = vector.load %arg5[%c0_21, %c0_22, %c0_23] : memref<4x8x128xf32, #tpu.memory_space<vmem>>, vector<1x8x128xf32>
    %49 = vector.shape_cast %48 : vector<1x8x128xf32> to vector<8x128xf32>
    %50 = vector.shape_cast %40 : vector<32x128xf32> to vector<4x8x128xf32>
    %cst_24 = arith.constant dense<0.000000e+00> : vector<8x128xf32>
    %51 = vector.multi_reduction <add>, %50, %cst_24 [0] : vector<4x8x128xf32> to vector<8x128xf32>
    %52 = arith.addf %49, %51 : vector<8x128xf32>
    %c0_25 = arith.constant 0 : index
    %c0_26 = arith.constant 0 : index
    %c0_27 = arith.constant 0 : index
    %53 = vector.load %arg5[%c0_25, %c0_26, %c0_27] : memref<4x8x128xf32, #tpu.memory_space<vmem>>, vector<1x8x128xf32>
    %54 = vector.shape_cast %53 : vector<1x8x128xf32> to vector<8x128xf32>
    %55 = vector.shape_cast %52 : vector<8x128xf32> to vector<1x8x128xf32>
    tpu.vector_store %arg5[%c0_25, %c0_26, %c0_27], %55 {strides = array<i32>} : memref<4x8x128xf32, #tpu.memory_space<vmem>>, vector<1x8x128xf32>,
    %c1 = arith.constant 1 : index
    %c0_28 = arith.constant 0 : index
    %c0_29 = arith.constant 0 : index
    %56 = vector.load %arg5[%c1, %c0_28, %c0_29] : memref<4x8x128xf32, #tpu.memory_space<vmem>>, vector<1x8x128xf32>
    %57 = vector.shape_cast %56 : vector<1x8x128xf32> to vector<8x128xf32>
    %58 = vector.shape_cast %41 : vector<32x128xf32> to vector<4x8x128xf32>
    %cst_30 = arith.constant dense<0.000000e+00> : vector<8x128xf32>
    %59 = vector.multi_reduction <add>, %58, %cst_30 [0] : vector<4x8x128xf32> to vector<8x128xf32>
    %60 = arith.addf %57, %59 : vector<8x128xf32>
    %c1_31 = arith.constant 1 : index
    %c0_32 = arith.constant 0 : index
    %c0_33 = arith.constant 0 : index
    %61 = vector.load %arg5[%c1_31, %c0_32, %c0_33] : memref<4x8x128xf32, #tpu.memory_space<vmem>>, vector<1x8x128xf32>
    %62 = vector.shape_cast %61 : vector<1x8x128xf32> to vector<8x128xf32>
    %63 = vector.shape_cast %60 : vector<8x128xf32> to vector<1x8x128xf32>
    tpu.vector_store %arg5[%c1_31, %c0_32, %c0_33], %63 {strides = array<i32>} : memref<4x8x128xf32, #tpu.memory_space<vmem>>, vector<1x8x128xf32>,
    %c2 = arith.constant 2 : index
    %c0_34 = arith.constant 0 : index
    %c0_35 = arith.constant 0 : index
    %64 = vector.load %arg5[%c2, %c0_34, %c0_35] : memref<4x8x128xf32, #tpu.memory_space<vmem>>, vector<1x8x128xf32>
    %65 = vector.shape_cast %64 : vector<1x8x128xf32> to vector<8x128xf32>
    %66 = vector.shape_cast %44 : vector<32x128xf32> to vector<4x8x128xf32>
    %cst_36 = arith.constant dense<0.000000e+00> : vector<8x128xf32>
    %67 = vector.multi_reduction <add>, %66, %cst_36 [0] : vector<4x8x128xf32> to vector<8x128xf32>
    %68 = arith.addf %65, %67 : vector<8x128xf32>
    %c2_37 = arith.constant 2 : index
    %c0_38 = arith.constant 0 : index
    %c0_39 = arith.constant 0 : index
    %69 = vector.load %arg5[%c2_37, %c0_38, %c0_39] : memref<4x8x128xf32, #tpu.memory_space<vmem>>, vector<1x8x128xf32>
    %70 = vector.shape_cast %69 : vector<1x8x128xf32> to vector<8x128xf32>
    %71 = vector.shape_cast %68 : vector<8x128xf32> to vector<1x8x128xf32>
    tpu.vector_store %arg5[%c2_37, %c0_38, %c0_39], %71 {strides = array<i32>} : memref<4x8x128xf32, #tpu.memory_space<vmem>>, vector<1x8x128xf32>,
    %c3 = arith.constant 3 : index
    %c0_40 = arith.constant 0 : index
    %c0_41 = arith.constant 0 : index
    %72 = vector.load %arg5[%c3, %c0_40, %c0_41] : memref<4x8x128xf32, #tpu.memory_space<vmem>>, vector<1x8x128xf32>
    %73 = vector.shape_cast %72 : vector<1x8x128xf32> to vector<8x128xf32>
    %74 = vector.shape_cast %47 : vector<32x128xf32> to vector<4x8x128xf32>
    %cst_42 = arith.constant dense<0.000000e+00> : vector<8x128xf32>
    %75 = vector.multi_reduction <add>, %74, %cst_42 [0] : vector<4x8x128xf32> to vector<8x128xf32>
    %76 = arith.addf %73, %75 : vector<8x128xf32>
    %c3_43 = arith.constant 3 : index
    %c0_44 = arith.constant 0 : index
    %c0_45 = arith.constant 0 : index
    %77 = vector.load %arg5[%c3_43, %c0_44, %c0_45] : memref<4x8x128xf32, #tpu.memory_space<vmem>>, vector<1x8x128xf32>
    %78 = vector.shape_cast %77 : vector<1x8x128xf32> to vector<8x128xf32>
    %79 = vector.shape_cast %76 : vector<8x128xf32> to vector<1x8x128xf32>
    tpu.vector_store %arg5[%c3_43, %c0_44, %c0_45], %79 {strides = array<i32>} : memref<4x8x128xf32, #tpu.memory_space<vmem>>, vector<1x8x128xf32>,
    %c0_i32_46 = arith.constant 0 : i32
    %80 = arith.cmpi eq, %arg1, %c0_i32_46 : i32
    %81 = arith.extui %80 : i1 to i32
    %c0_i32_47 = arith.constant 0 : i32
    %82 = arith.cmpi ne, %81, %c0_i32_47 : i32
    scf.if %82 {
      %c0_48 = arith.constant 0 : index
      %c0_49 = arith.constant 0 : index
      %c0_50 = arith.constant 0 : index
      %83 = vector.load %arg5[%c0_48, %c0_49, %c0_50] : memref<4x8x128xf32, #tpu.memory_space<vmem>>, vector<1x8x128xf32>
      %84 = vector.shape_cast %83 : vector<1x8x128xf32> to vector<8x128xf32>
      %85 = vector.shape_cast %84 : vector<8x128xf32> to vector<1x8x128xf32>
      %cst_51 = arith.constant dense<0.000000e+00> : vector<1xf32>
      %86 = vector.multi_reduction <add>, %85, %cst_51 [1, 2] : vector<1x8x128xf32> to vector<1xf32>
      %87 = vector.shape_cast %86 : vector<1xf32> to vector<1x1x1xf32>
      %88 = vector.extract %87[0, 0, 0] : f32 from vector<1x1x1xf32>
      %c1_52 = arith.constant 1 : index
      %c0_53 = arith.constant 0 : index
      %c0_54 = arith.constant 0 : index
      %89 = vector.load %arg5[%c1_52, %c0_53, %c0_54] : memref<4x8x128xf32, #tpu.memory_space<vmem>>, vector<1x8x128xf32>
      %90 = vector.shape_cast %89 : vector<1x8x128xf32> to vector<8x128xf32>
      %91 = vector.shape_cast %90 : vector<8x128xf32> to vector<1x8x128xf32>
      %cst_55 = arith.constant dense<0.000000e+00> : vector<1xf32>
      %92 = vector.multi_reduction <add>, %91, %cst_55 [1, 2] : vector<1x8x128xf32> to vector<1xf32>
      %93 = vector.shape_cast %92 : vector<1xf32> to vector<1x1x1xf32>
      %94 = vector.extract %93[0, 0, 0] : f32 from vector<1x1x1xf32>
      %c2_56 = arith.constant 2 : index
      %c0_57 = arith.constant 0 : index
      %c0_58 = arith.constant 0 : index
      %95 = vector.load %arg5[%c2_56, %c0_57, %c0_58] : memref<4x8x128xf32, #tpu.memory_space<vmem>>, vector<1x8x128xf32>
      %96 = vector.shape_cast %95 : vector<1x8x128xf32> to vector<8x128xf32>
      %97 = vector.shape_cast %96 : vector<8x128xf32> to vector<1x8x128xf32>
      %cst_59 = arith.constant dense<0.000000e+00> : vector<1xf32>
      %98 = vector.multi_reduction <add>, %97, %cst_59 [1, 2] : vector<1x8x128xf32> to vector<1xf32>
      %99 = vector.shape_cast %98 : vector<1xf32> to vector<1x1x1xf32>
      %100 = vector.extract %99[0, 0, 0] : f32 from vector<1x1x1xf32>
      %c3_60 = arith.constant 3 : index
      %c0_61 = arith.constant 0 : index
      %c0_62 = arith.constant 0 : index
      %101 = vector.load %arg5[%c3_60, %c0_61, %c0_62] : memref<4x8x128xf32, #tpu.memory_space<vmem>>, vector<1x8x128xf32>
      %102 = vector.shape_cast %101 : vector<1x8x128xf32> to vector<8x128xf32>
      %103 = vector.shape_cast %102 : vector<8x128xf32> to vector<1x8x128xf32>
      %cst_63 = arith.constant dense<0.000000e+00> : vector<1xf32>
      %104 = vector.multi_reduction <add>, %103, %cst_63 [1, 2] : vector<1x8x128xf32> to vector<1xf32>
      %105 = vector.shape_cast %104 : vector<1xf32> to vector<1x1x1xf32>
      %106 = vector.extract %105[0, 0, 0] : f32 from vector<1x1x1xf32>
      %107 = tpu.iota {dimensions = array<i32: 0>} : vector<8x128xi32>
      %108 = tpu.iota {dimensions = array<i32: 1>} : vector<8x128xi32>
      %cst_64 = arith.constant 0.000000e+00 : f32
      %109 = vector.broadcast %cst_64 : f32 to vector<8x128xf32>
      %c0_i32_65 = arith.constant 0 : i32
      %110 = vector.broadcast %c0_i32_65 : i32 to vector<8x128xi32>
      %111 = arith.cmpi eq, %107, %110 : vector<8x128xi32>
      %c0_i32_66 = arith.constant 0 : i32
      %112 = vector.broadcast %c0_i32_66 : i32 to vector<8x128xi32>
      %113 = arith.cmpi eq, %108, %112 : vector<8x128xi32>
      %114 = arith.andi %111, %113 : vector<8x128xi1>
      %115 = vector.broadcast %88 : f32 to vector<8x128xf32>
      %116 = arith.select %114, %115, %109 : vector<8x128xi1>, vector<8x128xf32>
      %c0_i32_67 = arith.constant 0 : i32
      %117 = vector.broadcast %c0_i32_67 : i32 to vector<8x128xi32>
      %118 = arith.cmpi eq, %107, %117 : vector<8x128xi32>
      %c1_i32 = arith.constant 1 : i32
      %119 = vector.broadcast %c1_i32 : i32 to vector<8x128xi32>
      %120 = arith.cmpi eq, %108, %119 : vector<8x128xi32>
      %121 = arith.andi %118, %120 : vector<8x128xi1>
      %122 = vector.broadcast %94 : f32 to vector<8x128xf32>
      %123 = arith.select %121, %122, %116 : vector<8x128xi1>, vector<8x128xf32>
      %c0_i32_68 = arith.constant 0 : i32
      %124 = vector.broadcast %c0_i32_68 : i32 to vector<8x128xi32>
      %125 = arith.cmpi eq, %107, %124 : vector<8x128xi32>
      %c2_i32 = arith.constant 2 : i32
      %126 = vector.broadcast %c2_i32 : i32 to vector<8x128xi32>
      %127 = arith.cmpi eq, %108, %126 : vector<8x128xi32>
      %128 = arith.andi %125, %127 : vector<8x128xi1>
      %129 = vector.broadcast %100 : f32 to vector<8x128xf32>
      %130 = arith.select %128, %129, %123 : vector<8x128xi1>, vector<8x128xf32>
      %c0_i32_69 = arith.constant 0 : i32
      %131 = vector.broadcast %c0_i32_69 : i32 to vector<8x128xi32>
      %132 = arith.cmpi eq, %107, %131 : vector<8x128xi32>
      %c3_i32 = arith.constant 3 : i32
      %133 = vector.broadcast %c3_i32 : i32 to vector<8x128xi32>
      %134 = arith.cmpi eq, %108, %133 : vector<8x128xi32>
      %135 = arith.andi %132, %134 : vector<8x128xi1>
      %136 = vector.broadcast %106 : f32 to vector<8x128xf32>
      %137 = arith.select %135, %136, %130 : vector<8x128xi1>, vector<8x128xf32>
      %c0_70 = arith.constant 0 : index
      %c0_71 = arith.constant 0 : index
      %c0_72 = arith.constant 0 : index
      %138 = vector.load %arg4[%c0_70, %c0_71, %c0_72] : memref<1x8x128xf32, #tpu.memory_space<vmem>>, vector<1x8x128xf32>
      %139 = vector.shape_cast %138 : vector<1x8x128xf32> to vector<8x128xf32>
      %140 = vector.shape_cast %137 : vector<8x128xf32> to vector<1x8x128xf32>
      tpu.vector_store %arg4[%c0_70, %c0_71, %c0_72], %140 {strides = array<i32>} : memref<1x8x128xf32, #tpu.memory_space<vmem>>, vector<1x8x128xf32>,
    } else {
    }
    return
  }
  func.func @transform_0(%arg0: i32, %arg1: i32) -> (i32, i32, i32) {
    %c1_i32 = arith.constant 1 : i32
    %0 = arith.muli %arg0, %c1_i32 : i32
    %1 = arith.addi %0, %arg1 : i32
    %c0_i32 = arith.constant 0 : i32
    %c0_i32_0 = arith.constant 0 : i32
    %c0_i32_1 = arith.constant 0 : i32
    return %c0_i32, %1, %c0_i32_0 : i32, i32, i32
  }
  func.func @transform_1(%arg0: i32, %arg1: i32) -> (i32, i32, i32) {
    %c1_i32 = arith.constant 1 : i32
    %0 = arith.muli %arg0, %c1_i32 : i32
    %1 = arith.addi %0, %arg1 : i32
    %c0_i32 = arith.constant 0 : i32
    %c0_i32_0 = arith.constant 0 : i32
    %c0_i32_1 = arith.constant 0 : i32
    return %c0_i32, %1, %c0_i32_0 : i32, i32, i32
  }
  func.func @transform_2(%arg0: i32, %arg1: i32) -> (i32, i32, i32) {
    %c0_i32 = arith.constant 0 : i32
    %c0_i32_0 = arith.constant 0 : i32
    %c0_i32_1 = arith.constant 0 : i32
    return %arg0, %c0_i32, %c0_i32_0 : i32, i32, i32
  }
}

</mosaic_0001>

<bundles_post_ra>
// kernel: tpu_custom_call.1
= control target key start
LH: loop header
LB: loop body
LE: loop exit
PB: predicated region body
PF: predicated region fallthrough
CT: control target
= control target key end

     0   :  { %7 = vsyncpa [#allocation4], 0  ;;  %s720_s0 = inlined_call_operand.hbm [shape: f32[2,32,128], index: 0, kind: input, shape index: {}]   ;;  %s721_s1 = inlined_call_operand.hbm [shape: s8[2,32,128], index: 1, kind: input, shape index: {}]   ;;  %s722_s2 = inlined_call_operand.hbm [shape: f32[1,8,128], index: 2, kind: output, shape index: {}]  }
   0x1   :  { %8 = vsyncpa [#allocation7], 0 }
   0x2   :  { %9 = vsyncpa [#allocation5], 0  ;;  %s511_s9 = smov [#allocation3]  }
   0x3   :  { %s19_s10 = sshll.u32 %s511_s9, 4  ;;  %s20_s10 = int_to_ptr.vmem [resolvable:$true] %s19_s10 }
   0x4   :  { %s453_s11 = scalar_lea.vmem %s20_s10, 1024  ;;  %p458_p1 = scmp.lt.s32.totalorder %s20_s10, %s20_s10 }
   0x5   :  { %p454_p0 = scmp.ne.s32.totalorder %s20_s10, %s453_s11  ;;  %p459_p2 = scmp.lt.s32.totalorder %s453_s11, %s453_s11 }
   0x7   :  { %p460_p3 = por %p459_p2, %p458_p1 }
   0x9   :  { %p461_p4 = pnand %p460_p3, %p454_p0 }
   0xb   :  { %464 = shalt.err (!%p461_p4)
}
   0xc   :  { %s512_s12 = smov 128   ;;  %s513_s13 = smov 8  }
   0xd   :  { %25 = dma.hbm_to_vmem [thread:$0]  %s720_s0, 1024, %s20_s10, [#allocation4], %s512_s12, %s512_s12, %s513_s13  }
   0xe   :  { %s514_s16 = smov [#allocation6]  }
   0xf   :  { %s34_s17 = sshll.u32 %s514_s16, 4  ;;  %s35_s17 = int_to_ptr.vmem [resolvable:$true] %s34_s17 }
  0x10   :  { %s473_s18 = scalar_lea.vmem %s35_s17, 256  ;;  %p478_p6 = scmp.lt.s32.totalorder %s35_s17, %s35_s17 }
  0x11   :  { %p474_p5 = scmp.ne.s32.totalorder %s35_s17, %s473_s18  ;;  %p479_p7 = scmp.lt.s32.totalorder %s473_s18, %s473_s18 }
  0x13   :  { %p480_p8 = por %p479_p7, %p478_p6 }
  0x15   :  { %p481_p9 = pnand %p480_p8, %p474_p5 }
  0x17   :  { %484 = shalt.err (!%p481_p9)
}
  0x18   :  { %40 = dma.hbm_to_vmem [thread:$0]  %s721_s1, 256, %s35_s17, [#allocation7], %s512_s12, %s512_s12, %s513_s13  }
  0x19   :  { %505 = dma.done.wait [#allocation4], 1024  }
  0x1a   :  { %506 = vsyncadd [#allocation4], 4294966272 }
  0x1b   :  { %507 = dma.done.wait [#allocation7], 256  }
  0x1c   :  { %508 = vsyncadd [#allocation7], 4294967040  ;;  %v537_v0 = vld [vmem:[#allocation3] sm:$0xff]  ;;  %v539_v1 = vld [vmem:[#allocation3 + $0x8] sm:$0xff]  ;;  %s515_s21 = smov [#allocation8]  }
  0x1d   :  { %v541_v2 = vld [vmem:[#allocation3 + $0x10] sm:$0xff]  ;;  %v543_v3 = vld [vmem:[#allocation3 + $0x18] sm:$0xff]  ;;  %v545_v4 = vld [vmem:[#allocation3 + $0x20] sm:$0xff]  ;;  %v84_v6 = vsub.f32 0.0, %v537_v0  ;;  %v85_v7 = vsub.f32 0.0, %v539_v1  ;;  %s374_s22 = sshll.u32 %s515_s21, 4  ;;  %s375_s22 = int_to_ptr.vmem [resolvable:$true] %s374_s22 }
  0x1e   :  { %v547_v5 = vld [vmem:[#allocation3 + $0x28] sm:$0xff]  ;;  %v551_v8 = vld [vmem:[#allocation3 + $0x30] sm:$0xff]  ;;  %v86_v9 = vsub.f32 0.0, %v541_v2  ;;  %v87_v10 = vsub.f32 0.0, %v543_v3  ;;  %v555_v11 = vld [vmem:[#allocation3 + $0x38] sm:$0xff]  ;;  %v88_v12 = vsub.f32 0.0, %v545_v4  ;;  %p490_p11 = scmp.lt.s32.totalorder %s375_s22, %s375_s22 }
  0x1f   :  { %v729_v13 = vsub.f32 0.0, %v547_v5  ;;  %v728_v14 = vsub.f32 0.0, %v551_v8  ;;  %v92_v15 = vmul.f32 1.442695, %v84_v6  ;;  %v94_v16 = vmul.f32 1.442695, %v85_v7 }
  0x20   :  { %v727_v17 = vsub.f32 0.0, %v555_v11  ;;  %v96_v18 = vmul.f32 1.442695, %v86_v9  ;;  %v98_v19 = vmul.f32 1.442695, %v87_v10  ;;  %v66_v25 = vld [vmem:[#allocation6] sm:$0xff] }
  0x21   :  { %397 = vpow2.f32 %v92_v15  ;;  %v100_v20 = vmul.f32 1.442695, %v88_v12  ;;  %v102_v21 = vmul.f32 1.442695, %v729_v13  ;;  %v104_v22 = vmul.f32 1.442695, %v728_v14 }
  0x22   :  { %399 = vpow2.f32 %v94_v16  ;;  %v106_v23 = vmul.f32 1.442695, %v727_v17  ;;  %v67_v27 = vld [vmem:[#allocation6 + $0x8] sm:$0xff]  ;;  %v68_v32 = vunpack.c.0.s8 %v66_v25  ;;  %v69_v33 = vunpack.c.1.s8 %v66_v25  ;;  %s485_s25 = scalar_lea.vmem %s375_s22, 128 }
  0x23   :  { %401 = vpow2.f32 %v96_v18  ;;  %v72_v36 = vunpack.c.0.s8 %v67_v27  ;;  %v73_v37 = vunpack.c.1.s8 %v67_v27  ;;  %v70_v40 = vunpack.c.2.s8 %v66_v25  ;;  %p486_p10 = scmp.ne.s32.totalorder %s375_s22, %s485_s25  ;;  %p491_p12 = scmp.lt.s32.totalorder %s485_s25, %s485_s25 }
  0x24   :  { %403 = vpow2.f32 %v98_v19  ;;  %v74_v41 = vunpack.c.2.s8 %v67_v27  ;;  %v71_v44 = vunpack.c.3.s8 %v66_v25  ;;  %v75_v45 = vunpack.c.3.s8 %v67_v27 }
  0x25   :  { %405 = vpow2.f32 %v100_v20  ;;  %v76_v48 = vcvt.s32.f32 %v68_v32  ;;  %v77_v49 = vcvt.s32.f32 %v69_v33  ;;  %v80_v51 = vcvt.s32.f32 %v72_v36  ;;  %p492_p13 = por %p491_p12, %p490_p11 }
  0x26   :  { %407 = vpow2.f32 %v102_v21  ;;  %v81_v52 = vcvt.s32.f32 %v73_v37  ;;  %v78_v54 = vcvt.s32.f32 %v70_v40  ;;  %v82_v55 = vcvt.s32.f32 %v74_v41 }
  0x27   :  { %409 = vpow2.f32 %v104_v22  ;;  %v79_v56 = vcvt.s32.f32 %v71_v44  ;;  %v83_v57 = vcvt.s32.f32 %v75_v45  ;;  %v577_v58 = vadd.f32 %v80_v51, %v76_v48  ;;  %p493_p0 = pnand %p492_p13, %p486_p10 }
  0x28   :  { %411 = vpow2.f32 %v106_v23  ;;  %v579_v59 = vadd.f32 %v81_v52, %v77_v49  ;;  %v581_v60 = vadd.f32 %v82_v55, %v78_v54 }
  0x29   :  { %v583_v61 = vadd.f32 %v83_v57, %v79_v56  ;;  %v725_v63 = vsub.f32 2.0, %v577_v58 }
  0x2a   :  { %v724_v15 = vsub.f32 2.0, %v579_v59  ;;  %v723_v18 = vsub.f32 2.0, %v581_v60 }
  0x2b   :  { %v726_v22 = vsub.f32 2.0, %v583_v61 }
  0x2e   :  { %v398_v24 = vpop.eup %397 }
  0x2f   :  { %v400_v26 = vpop.eup %399  ;;  %v108_v28 = vadd.f32 1.0, %v398_v24 }
  0x30   :  { %v402_v29 = vpop.eup %401  ;;  %v109_v30 = vadd.f32 1.0, %v400_v26 }
  0x31   :  { %v404_v31 = vpop.eup %403  ;;  %v110_v34 = vadd.f32 1.0, %v402_v29  ;;  %413 = vrcp.f32 %v108_v28 }
  0x32   :  { %v406_v35 = vpop.eup %405  ;;  %v111_v38 = vadd.f32 1.0, %v404_v31  ;;  %415 = vrcp.f32 %v109_v30 }
  0x33   :  { %v408_v39 = vpop.eup %407  ;;  %v112_v42 = vadd.f32 1.0, %v406_v35  ;;  %417 = vrcp.f32 %v110_v34 }
  0x34   :  { %v410_v43 = vpop.eup %409  ;;  %v113_v46 = vadd.f32 1.0, %v408_v39  ;;  %419 = vrcp.f32 %v111_v38 }
  0x35   :  { %v412_v47 = vpop.eup %411  ;;  %v114_v50 = vadd.f32 1.0, %v410_v43  ;;  %421 = vrcp.f32 %v112_v42 }
  0x36   :  { %v115_v53 = vadd.f32 1.0, %v412_v47  ;;  %423 = vrcp.f32 %v113_v46 }
  0x37   :  { %425 = vrcp.f32 %v114_v50 }
  0x38   :  { %427 = vrcp.f32 %v115_v53 }
  0x39   :  { %429 = vlog2.f32 %v108_v28 }
  0x3a   :  { %431 = vlog2.f32 %v109_v30 }
  0x3b   :  { %433 = vlog2.f32 %v110_v34 }
  0x3c   :  { %435 = vlog2.f32 %v111_v38 }
  0x3d   :  { %437 = vlog2.f32 %v112_v42 }
  0x3e   :  { %v414_v62 = vpop.eup %413  ;;  %439 = vlog2.f32 %v113_v46 }
  0x3f   :  { %v416_v16 = vpop.eup %415  ;;  %441 = vlog2.f32 %v114_v50  ;;  %v172_v19 = vsub.f32 1.0, %v414_v62  ;;  %v204_v20 = vmul.f32 %v414_v62, %v414_v62 }
  0x40   :  { %v418_v21 = vpop.eup %417  ;;  %443 = vlog2.f32 %v115_v53  ;;  %v173_v23 = vsub.f32 1.0, %v416_v16  ;;  %v205_v24 = vmul.f32 %v416_v16, %v416_v16 }
  0x41   :  { %v420_v25 = vpop.eup %419  ;;  %v174_v26 = vsub.f32 1.0, %v418_v21  ;;  %v180_v27 = vmul.f32 %v172_v19, %v172_v19  ;;  %v589_v28 = vmul.f32 %v418_v21, %v418_v21  ;;  %v591_v29 = vmul.f32 -0.5, %v204_v20 }
  0x42   :  { %v593_v30 = vpop.eup %421  ;;  %v175_v31 = vsub.f32 1.0, %v420_v25  ;;  %v181_v32 = vmul.f32 %v173_v23, %v173_v23  ;;  %v595_v33 = vmul.f32 %v420_v25, %v420_v25  ;;  %v597_v34 = vmul.f32 -0.5, %v205_v24 }
  0x43   :  { %v599_v35 = vpop.eup %423  ;;  %v602_v36 = vadd.f32 %v593_v30, %v414_v62  ;;  %v605_v38 = vmul.f32 %v174_v26, %v174_v26  ;;  %v607_v39 = vmul.f32 -0.5, %v180_v27 }
  0x44   :  { %v609_v40 = vpop.eup %425  ;;  %v612_v41 = vadd.f32 %v599_v35, %v416_v16  ;;  %v615_v43 = vmul.f32 %v175_v31, %v175_v31  ;;  %v617_v44 = vmul.f32 -0.5, %v181_v32 }
  0x45   :  { %v619_v45 = vpop.eup %427  ;;  %v622_v46 = vadd.f32 %v609_v40, %v418_v21  ;;  %v264_v47 = vmul.f32 %v725_v63, %v602_v36  ;;  %v268_v48 = vsub.f32 2.0, %v602_v36 }
  0x46   :  { %v430_v50 = vpop.eup %429  ;;  %v630_v51 = vadd.f32 %v619_v45, %v420_v25  ;;  %v265_v52 = vmul.f32 %v724_v15, %v612_v41  ;;  %v269_v53 = vsub.f32 2.0, %v612_v41 }
  0x47   :  { %v432_v55 = vpop.eup %431  ;;  %v266_v56 = vmul.f32 %v723_v18, %v622_v46  ;;  %v270_v57 = vsub.f32 2.0, %v622_v46  ;;  %v272_v62 = vmul.f32 %v268_v48, %v577_v58  ;;  %v125_v16 = vmul.f32 0.6931472, %v430_v50 }
  0x48   :  { %v434_v19 = vpop.eup %433  ;;  %v267_v20 = vmul.f32 %v726_v22, %v630_v51  ;;  %v291_v21 = vadd.f32 %v265_v52, %v264_v47  ;;  %v271_v23 = vsub.f32 2.0, %v630_v51  ;;  %v273_v24 = vmul.f32 %v269_v53, %v579_v59 }
  0x49   :  { %v436_v25 = vpop.eup %435  ;;  %v274_v26 = vmul.f32 %v270_v57, %v581_v60  ;;  %v127_v27 = vmul.f32 0.6931472, %v432_v55  ;;  %v129_v31 = vmul.f32 0.6931472, %v434_v19  ;;  %v140_v32 = vsub.f32 0.0, %v125_v16 }
  0x4a   :  { %v438_v18 = vpop.eup %437  ;;  %v292_v15 = vadd.f32 %v291_v21, %v266_v56  ;;  %v275_v48 = vmul.f32 %v271_v23, %v583_v61  ;;  %v298_v50 = vadd.f32 %v273_v24, %v272_v62  ;;  %v131_v63 = vmul.f32 0.6931472, %v436_v25 }
  0x4b   :  { %v440_v54 = vpop.eup %439  ;;  %v133_v49 = vmul.f32 0.6931472, %v438_v18  ;;  %v141_v22 = vsub.f32 0.0, %v127_v27  ;;  %v142_v47 = vsub.f32 0.0, %v129_v31  ;;  %v148_v52 = vmax.f32 %v140_v32, -13.815511 }
  0x4c   :  { %v442_v42 = vpop.eup %441  ;;  %v293_v37 = vadd.f32 %v292_v15, %v267_v20  ;;  %v299_v53 = vadd.f32 %v298_v50, %v274_v26  ;;  %v135_v17 = vmul.f32 0.6931472, %v440_v54  ;;  %v143_v14 = vsub.f32 0.0, %v131_v63 }
  0x4d   :  { %v444_v57 = vpop.eup %443  ;;  %v137_v55 = vmul.f32 0.6931472, %v442_v42  ;;  %v144_v19 = vsub.f32 0.0, %v133_v49  ;;  %v149_v13 = vmax.f32 %v141_v22, -13.815511  ;;  %v156_v56 = vsub.f32 %v84_v6, %v125_v16 }
  0x4e   :  { %327 = vadd.xlane.f32.xlu1 %v293_v37  ;;  %v300_v62 = vadd.f32 %v299_v53, %v275_v48  ;;  %v139_v21 = vmul.f32 0.6931472, %v444_v57  ;;  %v145_v23 = vsub.f32 0.0, %v135_v17  ;;  %v150_v18 = vmax.f32 %v142_v47, -13.815511 }
  0x4f   :  { %v146_v24 = vsub.f32 0.0, %v137_v55  ;;  %v151_v25 = vmax.f32 %v143_v14, -13.815511  ;;  %v152_v32 = vmax.f32 %v144_v19, -13.815511  ;;  %v157_v15 = vsub.f32 %v85_v7, %v127_v27 }
  0x50   :  { %v147_v54 = vsub.f32 0.0, %v139_v21  ;;  %v153_v20 = vmax.f32 %v145_v23, -13.815511  ;;  %v158_v42 = vsub.f32 %v86_v9, %v129_v31  ;;  %v159_v0 = vsub.f32 %v87_v10, %v131_v63 }
  0x51   :  { %v154_v6 = vmax.f32 %v146_v24, -13.815511  ;;  %v160_v22 = vsub.f32 %v88_v12, %v133_v49  ;;  %v730_v37 = vsub.f32 0.0, %v547_v5  ;;  %v731_v14 = vsub.f32 0.0, %v551_v8 }
  0x52   :  { %337 = vadd.xlane.f32.xlu1 %v300_v62  ;;  %v155_v1 = vmax.f32 %v147_v54, -13.815511  ;;  %v732_v7 = vsub.f32 0.0, %v555_v11  ;;  %v164_v2 = vmax.f32 %v156_v56, -13.815511  ;;  %v733_v63 = vsub.f32 1.0, %v593_v30 }
  0x53   :  { %v161_v16 = vsub.f32 %v730_v37, %v135_v17  ;;  %v162_v26 = vsub.f32 %v731_v14, %v137_v55  ;;  %v165_v9 = vmax.f32 %v157_v15, -13.815511  ;;  %v166_v31 = vmax.f32 %v158_v42, -13.815511 }
  0x54   :  { %v163_v27 = vsub.f32 %v732_v7, %v139_v21  ;;  %v167_v3 = vmax.f32 %v159_v0, -13.815511  ;;  %v168_v10 = vmax.f32 %v160_v22, -13.815511  ;;  %v184_v4 = vmul.f32 %v733_v63, %v733_v63 }
  0x55   :  { %v169_v12 = vmax.f32 %v161_v16, -13.815511  ;;  %v170_v5 = vmax.f32 %v162_v26, -13.815511  ;;  %v734_v8 = vsub.f32 1.0, %v599_v35  ;;  %v735_v48 = vsub.f32 1.0, %v609_v40 }
  0x56   :  { %v171_v17 = vmax.f32 %v163_v27, -13.815511  ;;  %v736_v50 = vsub.f32 1.0, %v619_v45  ;;  %v190_v53 = vmul.f32 -0.5, %v605_v38  ;;  %v191_v57 = vmul.f32 -0.5, %v615_v43 }
  0x57   :  { %v185_v49 = vmul.f32 %v734_v8, %v734_v8  ;;  %v186_v11 = vmul.f32 %v735_v48, %v735_v48  ;;  %v192_v55 = vmul.f32 -0.5, %v184_v4  ;;  %v196_v56 = vmul.f32 %v607_v39, %v148_v52 }
  0x58   :  { %v187_v47 = vmul.f32 %v736_v50, %v736_v50  ;;  %v197_v62 = vmul.f32 %v617_v44, %v149_v13  ;;  %v198_v24 = vmul.f32 %v190_v53, %v150_v18  ;;  %v199_v15 = vmul.f32 %v191_v57, %v151_v25 }
  0x59   :  { %v193_v19 = vmul.f32 -0.5, %v185_v49  ;;  %v194_v21 = vmul.f32 -0.5, %v186_v11  ;;  %v200_v54 = vmul.f32 %v192_v55, %v152_v32  ;;  %v208_v0 = vmul.f32 %v593_v30, %v593_v30 }
  0x5a   :  { %v195_v23 = vmul.f32 -0.5, %v187_v47  ;;  %v209_v38 = vmul.f32 %v599_v35, %v599_v35  ;;  %v210_v37 = vmul.f32 %v609_v40, %v609_v40  ;;  %v211_v13 = vmul.f32 %v619_v45, %v619_v45 }
  0x5b   :  { %v201_v42 = vmul.f32 %v193_v19, %v153_v20  ;;  %v202_v22 = vmul.f32 %v194_v21, %v154_v6  ;;  %v214_v39 = vmul.f32 -0.5, %v589_v28  ;;  %v215_v44 = vmul.f32 -0.5, %v595_v33 }
  0x5c   :  { %v203_v43 = vmul.f32 %v195_v23, %v155_v1  ;;  %v216_v52 = vmul.f32 -0.5, %v208_v0  ;;  %v217_v18 = vmul.f32 -0.5, %v209_v38  ;;  %v218_v25 = vmul.f32 -0.5, %v210_v37 }
  0x5d   :  { %v219_v32 = vmul.f32 -0.5, %v211_v13  ;;  %v220_v30 = vmul.f32 %v591_v29, %v164_v2  ;;  %v221_v35 = vmul.f32 %v597_v34, %v165_v9  ;;  %v222_v20 = vmul.f32 %v214_v39, %v166_v31 }
  0x5e   :  { %v223_v6 = vmul.f32 %v215_v44, %v167_v3  ;;  %v224_v16 = vmul.f32 %v216_v52, %v168_v10  ;;  %v225_v14 = vmul.f32 %v217_v18, %v169_v12  ;;  %v226_v40 = vmul.f32 %v218_v25, %v170_v5 }
  0x5f   :  { %v227_v26 = vmul.f32 %v219_v32, %v171_v17  ;;  %v236_v1 = vadd.f32 %v200_v54, %v196_v56  ;;  %v237_v45 = vadd.f32 %v201_v42, %v197_v62  ;;  %v238_v7 = vadd.f32 %v202_v22, %v198_v24 }
  0x60   :  { %v239_v28 = vadd.f32 %v203_v43, %v199_v15  ;;  %v240_v27 = vadd.f32 %v224_v16, %v220_v30  ;;  %v241_v33 = vadd.f32 %v225_v14, %v221_v35  ;;  %v242_v63 = vadd.f32 %v226_v40, %v222_v20 }
  0x61   :  { %v243_v4 = vadd.f32 %v227_v26, %v223_v6  ;;  %v244_v8 = vmul.f32 %v236_v1, %v577_v58  ;;  %v245_v29 = vmul.f32 %v237_v45, %v579_v59  ;;  %v246_v34 = vmul.f32 %v238_v7, %v581_v60 }
  0x62   :  { %v247_v2 = vmul.f32 %v239_v28, %v583_v61  ;;  %v737_v9 = vsub.f32 2.0, %v577_v58  ;;  %v738_v3 = vsub.f32 2.0, %v579_v59  ;;  %v739_v12 = vsub.f32 2.0, %v581_v60 }
  0x63   :  { %v740_v17 = vsub.f32 2.0, %v583_v61  ;;  %v260_v48 = vmul.f32 %v602_v36, %v577_v58  ;;  %v261_v11 = vmul.f32 %v612_v41, %v579_v59  ;;  %v262_v53 = vmul.f32 %v622_v46, %v581_v60 }
  0x64   :  { %v252_v31 = vmul.f32 %v737_v9, %v240_v27  ;;  %v253_v10 = vmul.f32 %v738_v3, %v241_v33  ;;  %v254_v5 = vmul.f32 %v739_v12, %v242_v63  ;;  %v263_v21 = vmul.f32 %v630_v51, %v583_v61 }
  0x65   :  { %v255_v49 = vmul.f32 %v740_v17, %v243_v4  ;;  %v284_v55 = vadd.f32 %v261_v11, %v260_v48  ;;  %v346_v40 = vlaneseq }
  0x66   :  { %v256_v50 = vadd.f32 %v252_v31, %v244_v8  ;;  %v257_v47 = vadd.f32 %v253_v10, %v245_v29  ;;  %v258_v57 = vadd.f32 %v254_v5, %v246_v34 }
  0x67   :  { %v259_v19 = vadd.f32 %v255_v49, %v247_v2  ;;  %v285_v23 = vadd.f32 %v284_v55, %v262_v53  ;;  %v347_v26 = vshrl.u32 %v346_v40, 7  ;;  %v349_v1 = vand.u32 127, %v346_v40 }
  0x68   :  { %v277_v56 = vadd.f32 %v257_v47, %v256_v50 }
  0x69   :  { %v286_v58 = vadd.f32 %v285_v23, %v263_v21  ;;  %vm350_vm0 = vcmp.eq.s32.totalorder %v347_v26, 0  ;;  %vm351_vm1 = vcmp.eq.s32.totalorder %v349_v1, 0  ;;  %vm355_vm2 = vcmp.eq.s32.totalorder %v349_v1, 1 }
  0x6a   :  { %v278_v62 = vadd.f32 %v277_v56, %v258_v57  ;;  %vm359_vm3 = vcmp.eq.s32.totalorder %v349_v1, 2  ;;  %vm352_vm4 = vmand %vm350_vm0, %vm351_vm1  ;;  %vm363_vm5 = vcmp.eq.s32.totalorder %v349_v1, 3 }
  0x6b   :  { %vm356_vm6 = vmand %vm350_vm0, %vm355_vm2 }
  0x6c   :  { %v279_v24 = vadd.f32 %v278_v62, %v259_v19  ;;  %vm360_vm7 = vmand %vm350_vm0, %vm359_vm3 }
  0x6d   :  { %vm364_vm8 = vmand %vm350_vm0, %vm363_vm5 }
  0x6e   :  { %307 = vadd.xlane.f32.xlu0 %v279_v24 }
  0x72   :  { %317 = vadd.xlane.f32.xlu0 %v286_v58 }
  0xd7   :  { %v328_v36 = vpop.xlane.xlu1 %327 }
  0xd8   :  { %v329_v41 = vrot.slane %v328_v36, 4 }
  0xda   :  { %v330_v54 = vadd.f32 %v329_v41, %v328_v36 }
  0xdb   :  { %v338_v59 = vpop.xlane.xlu1 %337 }
  0xdc   :  { %v339_v15 = vrot.slane %v338_v59, 4  ;;  %v331_v38 = vrot.slane %v330_v54, 2 }
  0xde   :  { %v340_v60 = vadd.f32 %v339_v15, %v338_v59  ;;  %v332_v39 = vadd.f32 %v331_v38, %v330_v54 }
  0xe0   :  { %v341_v43 = vrot.slane %v340_v60, 2  ;;  %v333_v30 = vrot.slane %v332_v39, 1 }
  0xe2   :  { %v342_v44 = vadd.f32 %v341_v43, %v340_v60  ;;  %v334_v16 = vadd.f32 %v333_v30, %v332_v39 }
  0xe4   :  { %v343_v20 = vrot.slane %v342_v44, 1 }
  0xe6   :  { %v344_v14 = vadd.f32 %v343_v20, %v342_v44 }
  0xf7   :  { %v308_v42 = vpop.xlane.xlu0 %307 }
  0xf8   :  { %v309_v46 = vrot.slane %v308_v42, 4 }
  0xfa   :  { %v310_v0 = vadd.f32 %v309_v46, %v308_v42 }
  0xfb   :  { %v318_v22 = vpop.xlane.xlu0 %317 }
  0xfc   :  { %v311_v37 = vrot.slane %v310_v0, 2  ;;  %v319_v13 = vrot.slane %v318_v22, 4 }
  0xfe   :  { %v320_v61 = vadd.f32 %v319_v13, %v318_v22  ;;  %v312_v51 = vadd.f32 %v311_v37, %v310_v0 }
 0x100   :  { %v321_v52 = vrot.slane %v320_v61, 2  ;;  %v313_v18 = vrot.slane %v312_v51, 1 }
 0x102   :  { %v322_v25 = vadd.f32 %v321_v52, %v320_v61  ;;  %v314_v32 = vadd.f32 %v313_v18, %v312_v51 }
 0x104   :  { %384 = vpush %v314_v32  ;;  %v323_v35 = vrot.slane %v322_v25, 1 }
 0x106   :  { %v324_v6 = vadd.f32 %v323_v35, %v322_v25 }
 0x108   :  { %386 = vpush %v324_v6 }
 0x109   :  { %388 = vpush %v334_v16 }
 0x10a   :  { %390 = vpush %v344_v14 }
 0x135   :  { %s385_s0 = spop %384 }
 0x136   :  { %v353_v45 = vstv %s385_s0 }
 0x137   :  { %v354_v7 = vsel %vm352_vm4, %v353_v45, 0.0 }
 0x139   :  { %s387_s1 = spop %386 }
 0x13a   :  { %v357_v28 = vstv %s387_s1  ;;  %s389_s23 = spop %388 }
 0x13b   :  { %v358_v27 = vsel %vm356_vm6, %v357_v28, %v354_v7  ;;  %v361_v33 = vstv %s389_s23  ;;  %s391_s24 = spop %390 }
 0x13c   :  { %v362_v63 = vsel %vm360_vm7, %v361_v33, %v358_v27  ;;  %v365_v4 = vstv %s391_s24 }
 0x13d   :  { %v366_v8 = vsel %vm364_vm8, %v365_v4, %v362_v63 }
 0x13e   :  { %367 = vst [vmem:[#allocation8] sm:$0xff] %v366_v8 }
 0x13f   :  { %496 = shalt.err (!%p493_p0)
}
 0x140   :  { %377 = dma.vmem_to_hbm [thread:$0]  %s375_s22, 128, %s722_s2, [#allocation5]  }
 0x141   :  { %509 = dma.done.wait [#allocation5], 128  }
 0x142   :  { %510 = vsyncadd [#allocation5], 4294967168 }
 0x143   :  { %381 = vsyncpa [#allocation4], 1 }
 0x144   :  { %382 = vsyncpa [#allocation7], 1 }
 0x145   :  { %383 = vsyncpa [#allocation5], 1 }

</bundles_post_ra>
